<compile_context>
chip_gen: v7x
topology: tpu7x:2x2x1
jax: 0.10.0
libtpu: 0.0.40
codegen_flags: <defaults>
</compile_context>

<pallas_src>
import functools
import math

import jax
import jax.numpy as jnp
from jax.experimental import pallas as pl
from jax.experimental.pallas import tpu as pltpu


# VMEM budgets (bytes).  Conservative so the kernel fits every generation
# (v7x: 64 MiB physical per TensorCore; v5e/v6e: 128 MiB).
_OUT_VMEM_BUDGET = 16 * 1024 * 1024   # output block is double-buffered by the pipeline
_BUF_VMEM_BUDGET = 4 * 1024 * 1024    # gather landing buffer (2 slots)
_VMEM_LIMIT_BYTES = 48 * 1024 * 1024  # scoped VMEM limit; usage stays well below


# ---------------------------------------------------------------------------
# Path 1: HBM row gather (large tables).  Table stays in HBM; rows are fetched
# with per-row async DMAs into a double-buffered VMEM landing buffer.
# ---------------------------------------------------------------------------
def _embedding_hbm_gather_kernel(ids_ref, table_ref, out_ref, buf_ref, sem, *,
                                 tok_block, chunk, num_tokens, vocab_size, scale):
    """ids_ref:  (T,)             int32 SMEM (scalar-prefetched token ids)
       table_ref:(V, D)           HBM ref (no auto-DMA)
       out_ref:  (tok_block, D)   VMEM output block
       buf_ref:  (2, chunk, D)    VMEM double-buffered landing buffer
       sem:      (2,)             DMA semaphores, one per slot
    """
    n_chunks = tok_block // chunk            # static: chunk always divides tok_block
    unroll = 8 if chunk % 8 == 0 else 1      # static
    base = pl.program_id(0) * tok_block
    last_tok = num_tokens - 1
    last_row = vocab_size - 1

    def issue_chunk(c, slot):
        """Start exactly `chunk` row DMAs: table rows -> buf_ref[slot]."""
        cbase = base + c * chunk

        def start_row(t, tok):
            # Clamp the id so a bad token id can never become an OOB HBM read.
            row = jnp.clip(ids_ref[tok], 0, last_row)
            pltpu.make_async_copy(table_ref.at[row], buf_ref.at[slot, t],
                                  sem.at[slot]).start()

        def issue(tok_of_t):
            @pl.loop(0, chunk // unroll)
            def _(u):
                t0 = u * unroll
                if unroll > 1:
                    t0 = pl.multiple_of(t0, unroll)
                for du in range(unroll):     # modest unroll: scalar math co-issues
                    t = t0 + du              # with DMA descriptor pushes
                    start_row(t, tok_of_t(t))

        is_full = cbase + chunk <= num_tokens

        @pl.when(is_full)
        def _():                             # hot path: no per-row clamping
            issue(lambda t: cbase + t)

        @pl.when(jnp.logical_not(is_full))
        def _():                             # ragged tail: re-fetch the last valid
            issue(lambda t: jnp.minimum(cbase + t, last_tok))   # row; extra rows are
                                                                # masked at writeback.

    def wait_chunk(slot):
        # Every row copy has identical byte size (one full table row) and signals
        # sem[slot], so a single wait whose descriptor covers the whole (chunk, D)
        # landing buffer consumes exactly `chunk` row-completions.  Keep this
        # invariant if row sizes ever change.
        pltpu.make_async_copy(buf_ref.at[slot], buf_ref.at[slot], sem.at[slot]).wait()

    issue_chunk(0, 0)                        # prime the double buffer
    for c in range(n_chunks):                # static, small (typically <= 4)
        slot = c & 1
        if c + 1 < n_chunks:
            # Prefetch the next chunk (all its SMEM id reads happen here, BEFORE
            # the wait below) so DMA latency hides behind this chunk's scale/store.
            issue_chunk(c + 1, 1 - slot)
        wait_chunk(slot)
        out_ref[pl.ds(c * chunk, chunk), :] = (
            buf_ref[slot] * scale).astype(out_ref.dtype)


# ---------------------------------------------------------------------------
# Path 2: small-table fast path.  Whole table resident in VMEM (constant
# index_map -> loaded once); rows gathered with in-VMEM dynamic slices.
# ---------------------------------------------------------------------------
def _embedding_vmem_kernel(ids_ref, table_ref, out_ref, *,
                           tok_block, num_tokens, vocab_size, scale):
    base = pl.program_id(0) * tok_block
    last_tok = num_tokens - 1
    last_row = vocab_size - 1
    unroll = 8 if tok_block % 8 == 0 else 1

    def gather(tok_of_t):
        @pl.loop(0, tok_block // unroll)
        def _(u):
            t0 = u * unroll
            if unroll > 1:
                t0 = pl.multiple_of(t0, unroll)
            for du in range(unroll):
                t = t0 + du
                row = jnp.clip(ids_ref[tok_of_t(t)], 0, last_row)
                out_ref[pl.ds(t, 1), :] = table_ref[pl.ds(row, 1), :]

    is_full = base + tok_block <= num_tokens

    @pl.when(is_full)
    def _():
        gather(lambda t: base + t)

    @pl.when(jnp.logical_not(is_full))
    def _():
        gather(lambda t: jnp.minimum(base + t, last_tok))

    # One vectorized, lane-dense scale over the whole block (far cheaper than
    # scaling row-by-row at 1/8 sublane utilisation).
    out_ref[...] = out_ref[...] * scale


# ---------------------------------------------------------------------------
# Block-size selection (VMEM-aware) and dispatch.
# ---------------------------------------------------------------------------
def _choose_tok_block(num_tokens, row_bytes, max_tok_block):
    tb = min(max_tok_block, max(8, _OUT_VMEM_BUDGET // (2 * row_bytes)))
    if tb >= num_tokens:
        return num_tokens                     # full token dim: always a legal block
    if tb >= 128:
        return (tb // 128) * 128
    return max(8, (tb // 8) * 8)


def _choose_chunk(tok_block, row_bytes):
    cap = max(8, _BUF_VMEM_BUDGET // (2 * row_bytes))
    for c in (128, 64, 32, 16, 8):
        if c <= cap and c <= tok_block and tok_block % c == 0:
            return c
    return tok_block                          # single chunk (tiny / odd-sized blocks)


def _embeddings_block(ids, table, *, scale, max_tok_block, vmem_table_limit_bytes):
    (num_tokens,) = ids.shape
    vocab_size, d_model = table.shape
    itemsize = table.dtype.itemsize
    row_bytes = d_model * itemsize

    tok_block = _choose_tok_block(num_tokens, row_bytes, max_tok_block)
    num_blocks = pl.cdiv(num_tokens, tok_block)

    out_shape = jax.ShapeDtypeStruct((num_tokens, d_model), table.dtype)
    out_spec = pl.BlockSpec((tok_block, d_model), lambda i, ids_ref: (i, 0))
    compiler_params = pltpu.CompilerParams(
        dimension_semantics=("parallel",),     # shards token blocks across the two
                                               # TensorCores on v7x (no-op on v5e/v6e)
        vmem_limit_bytes=_VMEM_LIMIT_BYTES)

    table_bytes = vocab_size * d_model * itemsize
    if table_bytes <= vmem_table_limit_bytes:
        # Small-table fast path: VMEM-resident table, no per-row DMAs.
        kernel = functools.partial(
            _embedding_vmem_kernel, tok_block=tok_block,
            num_tokens=num_tokens, vocab_size=vocab_size, scale=scale)
        grid_spec = pltpu.PrefetchScalarGridSpec(
            num_scalar_prefetch=1,                             # ids -> SMEM
            grid=(num_blocks,),
            in_specs=[pl.BlockSpec((vocab_size, d_model), lambda i, ids_ref: (0, 0))],
            out_specs=out_spec)
    else:
        chunk = _choose_chunk(tok_block, row_bytes)
        kernel = functools.partial(
            _embedding_hbm_gather_kernel, tok_block=tok_block, chunk=chunk,
            num_tokens=num_tokens, vocab_size=vocab_size, scale=scale)
        grid_spec = pltpu.PrefetchScalarGridSpec(
            num_scalar_prefetch=1,                             # ids -> SMEM
            grid=(num_blocks,),
            in_specs=[pl.BlockSpec(memory_space=pl.ANY)],      # table stays in HBM
            out_specs=out_spec,
            scratch_shapes=[
                pltpu.VMEM((2, chunk, d_model), table.dtype),  # double-buffered gather
                pltpu.SemaphoreType.DMA((2,)),                 # one semaphore per slot
            ])

    return pl.pallas_call(
        kernel, out_shape=out_shape, grid_spec=grid_spec,
        compiler_params=compiler_params)(ids, table)


def embeddings_forward(input_ids, table, *, max_tok_block=512,
                       vmem_table_limit_bytes=8 << 20,
                       max_prefetch_tokens=16384):
    """input_ids: (B, S) int; table: (V, D) -> (B, S, D) = table[ids] * sqrt(D)."""
    batch, seq = input_ids.shape
    _, d_model = table.shape
    scale = math.sqrt(float(d_model))
    total = batch * seq
    ids_flat = input_ids.reshape(total).astype(jnp.int32)

    # SMEM guard: the scalar-prefetched id vector pads to next_pow2(4*T) bytes,
    # so process at most `max_prefetch_tokens` tokens per pallas_call.
    pieces = []
    for start in range(0, total, max_prefetch_tokens):
        stop = min(start + max_prefetch_tokens, total)
        pieces.append(_embeddings_block(
            ids_flat[start:stop], table, scale=scale, max_tok_block=max_tok_block,
            vmem_table_limit_bytes=vmem_table_limit_bytes))
    out_flat = pieces[0] if len(pieces) == 1 else jnp.concatenate(pieces, axis=0)

    # Contiguous reshape only (no slice) -> no extra HBM copy.
    return out_flat.reshape(batch, seq, d_model)


def init_embeddings(key, vocab_size, d_model):
    # torch.nn.init.xavier_normal_ on (vocab_size, d_model):
    # std = gain * sqrt(2 / (fan_in + fan_out)) with gain = 1.
    std = math.sqrt(2.0 / (vocab_size + d_model))
    return jax.random.normal(key, (vocab_size, d_model), jnp.float32) * std


if __name__ == "__main__":
    key = jax.random.PRNGKey(0)
    k_tab1, k_ids1, k_ids2, k_tab3, k_ids3 = jax.random.split(key, 5)

    def reference(ids, tab):
        return tab[ids] * math.sqrt(float(tab.shape[1]))

    # 1) Small table, single full token block -> VMEM-resident fast path.
    vocab1, d1, b1, s1 = 64, 128, 2, 8
    tab1 = init_embeddings(k_tab1, vocab1, d1)
    ids1 = jax.random.randint(k_ids1, (b1, s1), 0, vocab1, dtype=jnp.int32)
    out1 = jax.block_until_ready(embeddings_forward(ids1, tab1))
    assert out1.shape == (b1, s1, d1)
    assert jnp.allclose(out1, reference(ids1, tab1), atol=1e-5, rtol=1e-5)

    # 2) Fast path with a ragged token-block grid (T=140, tok_block=128 -> 2 blocks,
    #    masked partial writeback of the tail block).
    b2, s2 = 2, 70
    ids2 = jax.random.randint(k_ids2, (b2, s2), 0, vocab1, dtype=jnp.int32)
    out2 = jax.block_until_ready(embeddings_forward(ids2, tab1, max_tok_block=128))
    assert out2.shape == (b2, s2, d1)
    assert jnp.allclose(out2, reference(ids2, tab1), atol=1e-5, rtol=1e-5)

    # 3) Forced HBM row-gather path (vmem_table_limit_bytes=0): T=400, tok_block=256,
    #    chunk=128 -> double-buffered chunks, collapsed waits, ragged tail chunk.
    vocab3, d3, b3, s3 = 512, 256, 2, 200
    tab3 = init_embeddings(k_tab3, vocab3, d3)
    ids3 = jax.random.randint(k_ids3, (b3, s3), 0, vocab3, dtype=jnp.int32)
    out3 = jax.block_until_ready(embeddings_forward(
        ids3, tab3, max_tok_block=256, vmem_table_limit_bytes=0))
    assert out3.shape == (b3, s3, d3)
    assert jnp.allclose(out3, reference(ids3, tab3), atol=1e-5, rtol=1e-5)

    print("KERNEL_OK")
</pallas_src>

<mosaic_0001>
module attributes {stable_mosaic.version = 11 : i64} {
  func.func @_embedding_vmem_kernel(%arg0: i32, %arg1: memref<16xi32, #tpu.memory_space<smem>>, %arg2: memref<64x128xf32, #tpu.memory_space<vmem>>, %arg3: memref<16x128xf32, #tpu.memory_space<vmem>>) attributes {dimension_semantics = [#tpu.dimension_semantics<parallel>], iteration_bounds = array<i64: 1>, scalar_prefetch = 1 : i64, scratch_operands = 0 : i64, tpu.core_type = #tpu.core_type<tc>, window_params = [{pipeline_mode = #tpu.pipeline_mode<synchronous>, transform_indices = @transform_0, window_bounds = array<i64: 64, 128>}, {transform_indices = @transform_1, window_bounds = array<i64: 16, 128>}]} {
    %c16_i32 = arith.constant 16 : i32
    %0 = arith.muli %arg0, %c16_i32 : i32
    %c16_i32_0 = arith.constant 16 : i32
    %1 = arith.addi %0, %c16_i32_0 : i32
    %c16_i32_1 = arith.constant 16 : i32
    %2 = arith.cmpi sle, %1, %c16_i32_1 : i32
    %3 = arith.extui %2 : i1 to i32
    %c0_i32 = arith.constant 0 : i32
    %4 = arith.cmpi ne, %3, %c0_i32 : i32
    scf.if %4 {
      %c0_i32_6 = arith.constant 0 : i32
      %c2_i32 = arith.constant 2 : i32
      %12 = arith.addi %c0_i32_6, %c2_i32 : i32
      %c1_i32 = arith.constant 1 : i32
      scf.for %arg4 = %c0_i32_6 to %12 step %c1_i32  : i32 {
        %c1_i32_8 = arith.constant 1 : i32
        %13 = arith.muli %arg4, %c1_i32_8 : i32
        %c0_i32_9 = arith.constant 0 : i32
        %14 = arith.addi %c0_i32_9, %13 : i32
        %c8_i32 = arith.constant 8 : i32
        %15 = arith.muli %14, %c8_i32 : i32
        %16 = tpu.assume_multiple %15, 8 : i32
        %c0_i32_10 = arith.constant 0 : i32
        %17 = arith.addi %16, %c0_i32_10 : i32
        %18 = arith.addi %0, %17 : i32
        %19 = arith.index_cast %18 : i32 to index
        %20 = memref.load %arg1[%19] : memref<16xi32, #tpu.memory_space<smem>>
        %c0_i32_11 = arith.constant 0 : i32
        %c63_i32 = arith.constant 63 : i32
        %21 = arith.maxsi %c0_i32_11, %20 : i32
        %22 = arith.minsi %c63_i32, %21 : i32
        %23 = arith.index_cast %22 : i32 to index
        %c0_12 = arith.constant 0 : index
        %24 = vector.load %arg2[%23, %c0_12] : memref<64x128xf32, #tpu.memory_space<vmem>>, vector<1x128xf32>
        %25 = arith.index_cast %17 : i32 to index
        %c0_13 = arith.constant 0 : index
        %26 = vector.load %arg3[%25, %c0_13] : memref<16x128xf32, #tpu.memory_space<vmem>>, vector<1x128xf32>
        tpu.vector_store %arg3[%25, %c0_13], %24 {strides = array<i32>} : memref<16x128xf32, #tpu.memory_space<vmem>>, vector<1x128xf32>,
        %c1_i32_14 = arith.constant 1 : i32
        %27 = arith.addi %16, %c1_i32_14 : i32
        %28 = arith.addi %0, %27 : i32
        %29 = arith.index_cast %28 : i32 to index
        %30 = memref.load %arg1[%29] : memref<16xi32, #tpu.memory_space<smem>>
        %c0_i32_15 = arith.constant 0 : i32
        %c63_i32_16 = arith.constant 63 : i32
        %31 = arith.maxsi %c0_i32_15, %30 : i32
        %32 = arith.minsi %c63_i32_16, %31 : i32
        %33 = arith.index_cast %32 : i32 to index
        %c0_17 = arith.constant 0 : index
        %34 = vector.load %arg2[%33, %c0_17] : memref<64x128xf32, #tpu.memory_space<vmem>>, vector<1x128xf32>
        %35 = arith.index_cast %27 : i32 to index
        %c0_18 = arith.constant 0 : index
        %36 = vector.load %arg3[%35, %c0_18] : memref<16x128xf32, #tpu.memory_space<vmem>>, vector<1x128xf32>
        tpu.vector_store %arg3[%35, %c0_18], %34 {strides = array<i32>} : memref<16x128xf32, #tpu.memory_space<vmem>>, vector<1x128xf32>,
        %c2_i32_19 = arith.constant 2 : i32
        %37 = arith.addi %16, %c2_i32_19 : i32
        %38 = arith.addi %0, %37 : i32
        %39 = arith.index_cast %38 : i32 to index
        %40 = memref.load %arg1[%39] : memref<16xi32, #tpu.memory_space<smem>>
        %c0_i32_20 = arith.constant 0 : i32
        %c63_i32_21 = arith.constant 63 : i32
        %41 = arith.maxsi %c0_i32_20, %40 : i32
        %42 = arith.minsi %c63_i32_21, %41 : i32
        %43 = arith.index_cast %42 : i32 to index
        %c0_22 = arith.constant 0 : index
        %44 = vector.load %arg2[%43, %c0_22] : memref<64x128xf32, #tpu.memory_space<vmem>>, vector<1x128xf32>
        %45 = arith.index_cast %37 : i32 to index
        %c0_23 = arith.constant 0 : index
        %46 = vector.load %arg3[%45, %c0_23] : memref<16x128xf32, #tpu.memory_space<vmem>>, vector<1x128xf32>
        tpu.vector_store %arg3[%45, %c0_23], %44 {strides = array<i32>} : memref<16x128xf32, #tpu.memory_space<vmem>>, vector<1x128xf32>,
        %c3_i32 = arith.constant 3 : i32
        %47 = arith.addi %16, %c3_i32 : i32
        %48 = arith.addi %0, %47 : i32
        %49 = arith.index_cast %48 : i32 to index
        %50 = memref.load %arg1[%49] : memref<16xi32, #tpu.memory_space<smem>>
        %c0_i32_24 = arith.constant 0 : i32
        %c63_i32_25 = arith.constant 63 : i32
        %51 = arith.maxsi %c0_i32_24, %50 : i32
        %52 = arith.minsi %c63_i32_25, %51 : i32
        %53 = arith.index_cast %52 : i32 to index
        %c0_26 = arith.constant 0 : index
        %54 = vector.load %arg2[%53, %c0_26] : memref<64x128xf32, #tpu.memory_space<vmem>>, vector<1x128xf32>
        %55 = arith.index_cast %47 : i32 to index
        %c0_27 = arith.constant 0 : index
        %56 = vector.load %arg3[%55, %c0_27] : memref<16x128xf32, #tpu.memory_space<vmem>>, vector<1x128xf32>
        tpu.vector_store %arg3[%55, %c0_27], %54 {strides = array<i32>} : memref<16x128xf32, #tpu.memory_space<vmem>>, vector<1x128xf32>,
        %c4_i32 = arith.constant 4 : i32
        %57 = arith.addi %16, %c4_i32 : i32
        %58 = arith.addi %0, %57 : i32
        %59 = arith.index_cast %58 : i32 to index
        %60 = memref.load %arg1[%59] : memref<16xi32, #tpu.memory_space<smem>>
        %c0_i32_28 = arith.constant 0 : i32
        %c63_i32_29 = arith.constant 63 : i32
        %61 = arith.maxsi %c0_i32_28, %60 : i32
        %62 = arith.minsi %c63_i32_29, %61 : i32
        %63 = arith.index_cast %62 : i32 to index
        %c0_30 = arith.constant 0 : index
        %64 = vector.load %arg2[%63, %c0_30] : memref<64x128xf32, #tpu.memory_space<vmem>>, vector<1x128xf32>
        %65 = arith.index_cast %57 : i32 to index
        %c0_31 = arith.constant 0 : index
        %66 = vector.load %arg3[%65, %c0_31] : memref<16x128xf32, #tpu.memory_space<vmem>>, vector<1x128xf32>
        tpu.vector_store %arg3[%65, %c0_31], %64 {strides = array<i32>} : memref<16x128xf32, #tpu.memory_space<vmem>>, vector<1x128xf32>,
        %c5_i32 = arith.constant 5 : i32
        %67 = arith.addi %16, %c5_i32 : i32
        %68 = arith.addi %0, %67 : i32
        %69 = arith.index_cast %68 : i32 to index
        %70 = memref.load %arg1[%69] : memref<16xi32, #tpu.memory_space<smem>>
        %c0_i32_32 = arith.constant 0 : i32
        %c63_i32_33 = arith.constant 63 : i32
        %71 = arith.maxsi %c0_i32_32, %70 : i32
        %72 = arith.minsi %c63_i32_33, %71 : i32
        %73 = arith.index_cast %72 : i32 to index
        %c0_34 = arith.constant 0 : index
        %74 = vector.load %arg2[%73, %c0_34] : memref<64x128xf32, #tpu.memory_space<vmem>>, vector<1x128xf32>
        %75 = arith.index_cast %67 : i32 to index
        %c0_35 = arith.constant 0 : index
        %76 = vector.load %arg3[%75, %c0_35] : memref<16x128xf32, #tpu.memory_space<vmem>>, vector<1x128xf32>
        tpu.vector_store %arg3[%75, %c0_35], %74 {strides = array<i32>} : memref<16x128xf32, #tpu.memory_space<vmem>>, vector<1x128xf32>,
        %c6_i32 = arith.constant 6 : i32
        %77 = arith.addi %16, %c6_i32 : i32
        %78 = arith.addi %0, %77 : i32
        %79 = arith.index_cast %78 : i32 to index
        %80 = memref.load %arg1[%79] : memref<16xi32, #tpu.memory_space<smem>>
        %c0_i32_36 = arith.constant 0 : i32
        %c63_i32_37 = arith.constant 63 : i32
        %81 = arith.maxsi %c0_i32_36, %80 : i32
        %82 = arith.minsi %c63_i32_37, %81 : i32
        %83 = arith.index_cast %82 : i32 to index
        %c0_38 = arith.constant 0 : index
        %84 = vector.load %arg2[%83, %c0_38] : memref<64x128xf32, #tpu.memory_space<vmem>>, vector<1x128xf32>
        %85 = arith.index_cast %77 : i32 to index
        %c0_39 = arith.constant 0 : index
        %86 = vector.load %arg3[%85, %c0_39] : memref<16x128xf32, #tpu.memory_space<vmem>>, vector<1x128xf32>
        tpu.vector_store %arg3[%85, %c0_39], %84 {strides = array<i32>} : memref<16x128xf32, #tpu.memory_space<vmem>>, vector<1x128xf32>,
        %c7_i32 = arith.constant 7 : i32
        %87 = arith.addi %16, %c7_i32 : i32
        %88 = arith.addi %0, %87 : i32
        %89 = arith.index_cast %88 : i32 to index
        %90 = memref.load %arg1[%89] : memref<16xi32, #tpu.memory_space<smem>>
        %c0_i32_40 = arith.constant 0 : i32
        %c63_i32_41 = arith.constant 63 : i32
        %91 = arith.maxsi %c0_i32_40, %90 : i32
        %92 = arith.minsi %c63_i32_41, %91 : i32
        %93 = arith.index_cast %92 : i32 to index
        %c0_42 = arith.constant 0 : index
        %94 = vector.load %arg2[%93, %c0_42] : memref<64x128xf32, #tpu.memory_space<vmem>>, vector<1x128xf32>
        %95 = arith.index_cast %87 : i32 to index
        %c0_43 = arith.constant 0 : index
        %96 = vector.load %arg3[%95, %c0_43] : memref<16x128xf32, #tpu.memory_space<vmem>>, vector<1x128xf32>
        tpu.vector_store %arg3[%95, %c0_43], %94 {strides = array<i32>} : memref<16x128xf32, #tpu.memory_space<vmem>>, vector<1x128xf32>,
      }
      %c2_i32_7 = arith.constant 2 : i32
    } else {
    }
    %true = arith.constant true
    %5 = arith.xori %2, %true : i1
    %6 = arith.extui %5 : i1 to i32
    %c0_i32_2 = arith.constant 0 : i32
    %7 = arith.cmpi ne, %6, %c0_i32_2 : i32
    scf.if %7 {
      %c0_i32_6 = arith.constant 0 : i32
      %c2_i32 = arith.constant 2 : i32
      %12 = arith.addi %c0_i32_6, %c2_i32 : i32
      %c1_i32 = arith.constant 1 : i32
      scf.for %arg4 = %c0_i32_6 to %12 step %c1_i32  : i32 {
        %c1_i32_8 = arith.constant 1 : i32
        %13 = arith.muli %arg4, %c1_i32_8 : i32
        %c0_i32_9 = arith.constant 0 : i32
        %14 = arith.addi %c0_i32_9, %13 : i32
        %c8_i32 = arith.constant 8 : i32
        %15 = arith.muli %14, %c8_i32 : i32
        %16 = tpu.assume_multiple %15, 8 : i32
        %c0_i32_10 = arith.constant 0 : i32
        %17 = arith.addi %16, %c0_i32_10 : i32
        %18 = arith.addi %0, %17 : i32
        %c15_i32 = arith.constant 15 : i32
        %19 = arith.minsi %18, %c15_i32 : i32
        %20 = arith.index_cast %19 : i32 to index
        %21 = memref.load %arg1[%20] : memref<16xi32, #tpu.memory_space<smem>>
        %c0_i32_11 = arith.constant 0 : i32
        %c63_i32 = arith.constant 63 : i32
        %22 = arith.maxsi %c0_i32_11, %21 : i32
        %23 = arith.minsi %c63_i32, %22 : i32
        %24 = arith.index_cast %23 : i32 to index
        %c0_12 = arith.constant 0 : index
        %25 = vector.load %arg2[%24, %c0_12] : memref<64x128xf32, #tpu.memory_space<vmem>>, vector<1x128xf32>
        %26 = arith.index_cast %17 : i32 to index
        %c0_13 = arith.constant 0 : index
        %27 = vector.load %arg3[%26, %c0_13] : memref<16x128xf32, #tpu.memory_space<vmem>>, vector<1x128xf32>
        tpu.vector_store %arg3[%26, %c0_13], %25 {strides = array<i32>} : memref<16x128xf32, #tpu.memory_space<vmem>>, vector<1x128xf32>,
        %c1_i32_14 = arith.constant 1 : i32
        %28 = arith.addi %16, %c1_i32_14 : i32
        %29 = arith.addi %0, %28 : i32
        %c15_i32_15 = arith.constant 15 : i32
        %30 = arith.minsi %29, %c15_i32_15 : i32
        %31 = arith.index_cast %30 : i32 to index
        %32 = memref.load %arg1[%31] : memref<16xi32, #tpu.memory_space<smem>>
        %c0_i32_16 = arith.constant 0 : i32
        %c63_i32_17 = arith.constant 63 : i32
        %33 = arith.maxsi %c0_i32_16, %32 : i32
        %34 = arith.minsi %c63_i32_17, %33 : i32
        %35 = arith.index_cast %34 : i32 to index
        %c0_18 = arith.constant 0 : index
        %36 = vector.load %arg2[%35, %c0_18] : memref<64x128xf32, #tpu.memory_space<vmem>>, vector<1x128xf32>
        %37 = arith.index_cast %28 : i32 to index
        %c0_19 = arith.constant 0 : index
        %38 = vector.load %arg3[%37, %c0_19] : memref<16x128xf32, #tpu.memory_space<vmem>>, vector<1x128xf32>
        tpu.vector_store %arg3[%37, %c0_19], %36 {strides = array<i32>} : memref<16x128xf32, #tpu.memory_space<vmem>>, vector<1x128xf32>,
        %c2_i32_20 = arith.constant 2 : i32
        %39 = arith.addi %16, %c2_i32_20 : i32
        %40 = arith.addi %0, %39 : i32
        %c15_i32_21 = arith.constant 15 : i32
        %41 = arith.minsi %40, %c15_i32_21 : i32
        %42 = arith.index_cast %41 : i32 to index
        %43 = memref.load %arg1[%42] : memref<16xi32, #tpu.memory_space<smem>>
        %c0_i32_22 = arith.constant 0 : i32
        %c63_i32_23 = arith.constant 63 : i32
        %44 = arith.maxsi %c0_i32_22, %43 : i32
        %45 = arith.minsi %c63_i32_23, %44 : i32
        %46 = arith.index_cast %45 : i32 to index
        %c0_24 = arith.constant 0 : index
        %47 = vector.load %arg2[%46, %c0_24] : memref<64x128xf32, #tpu.memory_space<vmem>>, vector<1x128xf32>
        %48 = arith.index_cast %39 : i32 to index
        %c0_25 = arith.constant 0 : index
        %49 = vector.load %arg3[%48, %c0_25] : memref<16x128xf32, #tpu.memory_space<vmem>>, vector<1x128xf32>
        tpu.vector_store %arg3[%48, %c0_25], %47 {strides = array<i32>} : memref<16x128xf32, #tpu.memory_space<vmem>>, vector<1x128xf32>,
        %c3_i32 = arith.constant 3 : i32
        %50 = arith.addi %16, %c3_i32 : i32
        %51 = arith.addi %0, %50 : i32
        %c15_i32_26 = arith.constant 15 : i32
        %52 = arith.minsi %51, %c15_i32_26 : i32
        %53 = arith.index_cast %52 : i32 to index
        %54 = memref.load %arg1[%53] : memref<16xi32, #tpu.memory_space<smem>>
        %c0_i32_27 = arith.constant 0 : i32
        %c63_i32_28 = arith.constant 63 : i32
        %55 = arith.maxsi %c0_i32_27, %54 : i32
        %56 = arith.minsi %c63_i32_28, %55 : i32
        %57 = arith.index_cast %56 : i32 to index
        %c0_29 = arith.constant 0 : index
        %58 = vector.load %arg2[%57, %c0_29] : memref<64x128xf32, #tpu.memory_space<vmem>>, vector<1x128xf32>
        %59 = arith.index_cast %50 : i32 to index
        %c0_30 = arith.constant 0 : index
        %60 = vector.load %arg3[%59, %c0_30] : memref<16x128xf32, #tpu.memory_space<vmem>>, vector<1x128xf32>
        tpu.vector_store %arg3[%59, %c0_30], %58 {strides = array<i32>} : memref<16x128xf32, #tpu.memory_space<vmem>>, vector<1x128xf32>,
        %c4_i32 = arith.constant 4 : i32
        %61 = arith.addi %16, %c4_i32 : i32
        %62 = arith.addi %0, %61 : i32
        %c15_i32_31 = arith.constant 15 : i32
        %63 = arith.minsi %62, %c15_i32_31 : i32
        %64 = arith.index_cast %63 : i32 to index
        %65 = memref.load %arg1[%64] : memref<16xi32, #tpu.memory_space<smem>>
        %c0_i32_32 = arith.constant 0 : i32
        %c63_i32_33 = arith.constant 63 : i32
        %66 = arith.maxsi %c0_i32_32, %65 : i32
        %67 = arith.minsi %c63_i32_33, %66 : i32
        %68 = arith.index_cast %67 : i32 to index
        %c0_34 = arith.constant 0 : index
        %69 = vector.load %arg2[%68, %c0_34] : memref<64x128xf32, #tpu.memory_space<vmem>>, vector<1x128xf32>
        %70 = arith.index_cast %61 : i32 to index
        %c0_35 = arith.constant 0 : index
        %71 = vector.load %arg3[%70, %c0_35] : memref<16x128xf32, #tpu.memory_space<vmem>>, vector<1x128xf32>
        tpu.vector_store %arg3[%70, %c0_35], %69 {strides = array<i32>} : memref<16x128xf32, #tpu.memory_space<vmem>>, vector<1x128xf32>,
        %c5_i32 = arith.constant 5 : i32
        %72 = arith.addi %16, %c5_i32 : i32
        %73 = arith.addi %0, %72 : i32
        %c15_i32_36 = arith.constant 15 : i32
        %74 = arith.minsi %73, %c15_i32_36 : i32
        %75 = arith.index_cast %74 : i32 to index
        %76 = memref.load %arg1[%75] : memref<16xi32, #tpu.memory_space<smem>>
        %c0_i32_37 = arith.constant 0 : i32
        %c63_i32_38 = arith.constant 63 : i32
        %77 = arith.maxsi %c0_i32_37, %76 : i32
        %78 = arith.minsi %c63_i32_38, %77 : i32
        %79 = arith.index_cast %78 : i32 to index
        %c0_39 = arith.constant 0 : index
        %80 = vector.load %arg2[%79, %c0_39] : memref<64x128xf32, #tpu.memory_space<vmem>>, vector<1x128xf32>
        %81 = arith.index_cast %72 : i32 to index
        %c0_40 = arith.constant 0 : index
        %82 = vector.load %arg3[%81, %c0_40] : memref<16x128xf32, #tpu.memory_space<vmem>>, vector<1x128xf32>
        tpu.vector_store %arg3[%81, %c0_40], %80 {strides = array<i32>} : memref<16x128xf32, #tpu.memory_space<vmem>>, vector<1x128xf32>,
        %c6_i32 = arith.constant 6 : i32
        %83 = arith.addi %16, %c6_i32 : i32
        %84 = arith.addi %0, %83 : i32
        %c15_i32_41 = arith.constant 15 : i32
        %85 = arith.minsi %84, %c15_i32_41 : i32
        %86 = arith.index_cast %85 : i32 to index
        %87 = memref.load %arg1[%86] : memref<16xi32, #tpu.memory_space<smem>>
        %c0_i32_42 = arith.constant 0 : i32
        %c63_i32_43 = arith.constant 63 : i32
        %88 = arith.maxsi %c0_i32_42, %87 : i32
        %89 = arith.minsi %c63_i32_43, %88 : i32
        %90 = arith.index_cast %89 : i32 to index
        %c0_44 = arith.constant 0 : index
        %91 = vector.load %arg2[%90, %c0_44] : memref<64x128xf32, #tpu.memory_space<vmem>>, vector<1x128xf32>
        %92 = arith.index_cast %83 : i32 to index
        %c0_45 = arith.constant 0 : index
        %93 = vector.load %arg3[%92, %c0_45] : memref<16x128xf32, #tpu.memory_space<vmem>>, vector<1x128xf32>
        tpu.vector_store %arg3[%92, %c0_45], %91 {strides = array<i32>} : memref<16x128xf32, #tpu.memory_space<vmem>>, vector<1x128xf32>,
        %c7_i32 = arith.constant 7 : i32
        %94 = arith.addi %16, %c7_i32 : i32
        %95 = arith.addi %0, %94 : i32
        %c15_i32_46 = arith.constant 15 : i32
        %96 = arith.minsi %95, %c15_i32_46 : i32
        %97 = arith.index_cast %96 : i32 to index
        %98 = memref.load %arg1[%97] : memref<16xi32, #tpu.memory_space<smem>>
        %c0_i32_47 = arith.constant 0 : i32
        %c63_i32_48 = arith.constant 63 : i32
        %99 = arith.maxsi %c0_i32_47, %98 : i32
        %100 = arith.minsi %c63_i32_48, %99 : i32
        %101 = arith.index_cast %100 : i32 to index
        %c0_49 = arith.constant 0 : index
        %102 = vector.load %arg2[%101, %c0_49] : memref<64x128xf32, #tpu.memory_space<vmem>>, vector<1x128xf32>
        %103 = arith.index_cast %94 : i32 to index
        %c0_50 = arith.constant 0 : index
        %104 = vector.load %arg3[%103, %c0_50] : memref<16x128xf32, #tpu.memory_space<vmem>>, vector<1x128xf32>
        tpu.vector_store %arg3[%103, %c0_50], %102 {strides = array<i32>} : memref<16x128xf32, #tpu.memory_space<vmem>>, vector<1x128xf32>,
      }
      %c2_i32_7 = arith.constant 2 : i32
    } else {
    }
    %c0 = arith.constant 0 : index
    %c0_3 = arith.constant 0 : index
    %8 = vector.load %arg3[%c0, %c0_3] : memref<16x128xf32, #tpu.memory_space<vmem>>, vector<16x128xf32>
    %cst = arith.constant 11.3137083 : f32
    %9 = vector.broadcast %cst : f32 to vector<16x128xf32>
    %10 = arith.mulf %8, %9 : vector<16x128xf32>
    %c0_4 = arith.constant 0 : index
    %c0_5 = arith.constant 0 : index
    %11 = vector.load %arg3[%c0_4, %c0_5] : memref<16x128xf32, #tpu.memory_space<vmem>>, vector<16x128xf32>
    tpu.vector_store %arg3[%c0_4, %c0_5], %10 {strides = array<i32>} : memref<16x128xf32, #tpu.memory_space<vmem>>, vector<16x128xf32>,
    return
  }
  func.func @transform_0(%arg0: i32, %arg1: memref<16xi32, #tpu.memory_space<smem>>) -> (i32, i32) {
    %c0_i32 = arith.constant 0 : i32
    %c0_i32_0 = arith.constant 0 : i32
    %c0_i32_1 = arith.constant 0 : i32
    return %c0_i32, %c0_i32_0 : i32, i32
  }
  func.func @transform_1(%arg0: i32, %arg1: memref<16xi32, #tpu.memory_space<smem>>) -> (i32, i32) {
    %c0_i32 = arith.constant 0 : i32
    %c0_i32_0 = arith.constant 0 : i32
    return %arg0, %c0_i32 : i32, i32
  }
}

</mosaic_0001>

<bundles_post_ra>
// kernel: tpu_custom_call.1
= control target key start
LH: loop header
LB: loop body
LE: loop exit
PB: predicated region body
PF: predicated region fallthrough
CT: control target
= control target key end

     0   :  { %s677_s0 = inlined_call_operand.hbm [shape: s32[16], index: 0, kind: input, shape index: {}]   ;;  %s678_s1 = inlined_call_operand.hbm [shape: f32[64,128], index: 1, kind: input, shape index: {}]   ;;  %s679_s2 = inlined_call_operand.hbm [shape: f32[16,128], index: 2, kind: output, shape index: {}]  }
   0x1   :  { %s492_s11 = scalar_lea.hbm %s677_s0, 16 }
   0x2   :  { %p493_p0 = scmp.ne.s32.totalorder %s677_s0, %s492_s11  ;;  %p496_p1 = scmp.lt.u32.totalorder %s492_s11, %s677_s0 }
   0x4   :  { %p498_p2 = pnand %p496_p1, %p493_p0 }
   0x6   :  { %501 = shalt.err (!%p498_p2)  }
   0x7   :  { %s560_s16 = smov [#allocation3]  }
   0x8   :  { %8 = dma.hbm_to_smem %s677_s0, 16, %s560_s16, [#allocation2] }
   0x9   :  { %550 = dma.done.wait [#allocation2], 16 }
   0xa   :  { %551 = vsyncadd [#allocation2], 4294967280 }
   0xb   :  { %10 = sfence }
   0xc   :  { %11 = vsyncpa [#allocation5], 0 }
   0xd   :  { %12 = vsyncpa [#allocation6], 0  ;;  %s561_s19 = smov [#allocation4]   ;;  %s502_s23 = scalar_lea.hbm %s678_s1, 1024 }
   0xe   :  { %s18_s20 = sshll.u32 %s561_s19, 4  ;;  %p503_p3 = scmp.ne.s32.totalorder %s678_s1, %s502_s23  ;;  %s19_s20 = int_to_ptr.vmem [resolvable:$true] %s18_s20 }
   0xf   :  { %p506_p4 = scmp.lt.u32.totalorder %s502_s23, %s678_s1 }
  0x11   :  { %p508_p5 = pnand %p506_p4, %p503_p3 }
  0x13   :  { %511 = shalt.err (!%p508_p5)
}
  0x14   :  { %s512_s0 = scalar_lea.vmem %s19_s20, 1024  ;;  %p517_p7 = scmp.lt.s32.totalorder %s19_s20, %s19_s20 }
  0x15   :  { %p513_p6 = scmp.ne.s32.totalorder %s19_s20, %s512_s0  ;;  %p518_p8 = scmp.lt.s32.totalorder %s512_s0, %s512_s0 }
  0x17   :  { %p519_p9 = por %p518_p8, %p517_p7 }
  0x19   :  { %p520_p10 = pnand %p519_p9, %p513_p6 }
  0x1b   :  { %523 = shalt.err (!%p520_p10)
}
  0x1c   :  { %s562_s28 = smov 128   ;;  %s563_s29 = smov 8  }
  0x1d   :  { %24 = dma.hbm_to_vmem [thread:$0]  %s678_s1, 1024, %s19_s20, [#allocation5], %s562_s28, %s562_s28, %s563_s29  }
  0x1e   :  { %552 = dma.done.wait [#allocation5], 1024  }
  0x1f   :  { %553 = vsyncadd [#allocation5], 4294966272  ;;  %s607_s4 = smov 0  }
  0x20 LB: > { %s613_s5 = sshll.u32 %s558_s4, 3  ;;  %s39_s4 = sadd.s32 1, %s558_s4   ;;  %s558_s4 = sphi %s607_s4, %s39_s4  }
  0x21   : > { %s42_s1 = sld [smem:[#allocation3 + %s613_s5]]  ;;  %s51_s6 = sadd.s32 1, %s613_s5 }
  0x22   : > { %s62_s7 = sadd.s32 2, %s613_s5  ;;  %s53_s8 = sld [smem:[#allocation3 + %s51_s6]] }
  0x23   : > { %s618_s9 = sld [smem:[#allocation3 + %s62_s7]]  ;;  %s73_s10 = sadd.s32 3, %s613_s5 }
  0x24   : > { %s84_s11 = sadd.s32 4, %s613_s5  ;;  %s622_s12 = sld [smem:[#allocation3 + %s73_s10]] }
  0x25   : > { %s624_s13 = sld [smem:[#allocation3 + %s84_s11]]  ;;  %s95_s14 = sadd.s32 5, %s613_s5 }
  0x26   : > { %s106_s15 = sadd.s32 6, %s613_s5  ;;  %s628_s16 = sld [smem:[#allocation3 + %s95_s14]] }
  0x27   : > { %p43_p11 = scmp.gt.s32.totalorder %s42_s1, 0  ;;  %p338_p12 = scmp.lt.s32.totalorder %s42_s1, 63 }
  0x28   : > { %s630_s17 = sld [smem:[#allocation3 + %s106_s15]]  ;;  %p54_p13 = scmp.gt.s32.totalorder %s53_s8, 0 }
  0x29   : > { %s681_s1 = smov (!%p43_p11, %s42_s1), 0  ;;  %p343_p0 = scmp.lt.s32.totalorder %s53_s8, 63 }
  0x2a   : > { %s683_s1 = smov (!%p338_p12, %s681_s1), 63  ;;  %s685_s8 = smov (!%p54_p13, %s53_s8), 0 }
  0x2b   : > { %p65_p1 = scmp.gt.s32.totalorder %s618_s9, 0  ;;  %s47_s18 = scalar_lea.vmem [#allocation4], %s683_s1 }
  0x2c   : > { %v48_v0 = vld [vmem:[%s47_s18] sm:$0x1]  ;;  %s687_s8 = smov (!%p343_p0, %s685_s8), 63  ;;  %s634_s19 = scalar_lea.vmem [#allocation7], %s613_s5 }
  0x2d   : > { %50 = vst [vmem:[%s634_s19] sm:$0x1] %v48_v0  ;;  %s66_s20 = scalar_select %p65_p1, %s618_s9, 0 }
  0x2e   : > { %p350_p2 = scmp.lt.s32.totalorder %s618_s9, 63  ;;  %s58_s21 = scalar_lea.vmem [#allocation4], %s687_s8 }
  0x2f   : > { %v59_v1 = vld [vmem:[%s58_s21] sm:$0x1]  ;;  %p76_p3 = scmp.gt.s32.totalorder %s622_s12, 0  ;;  %p357_p4 = scmp.lt.s32.totalorder %s622_s12, 63 }
  0x30   : > { %349 = vst [vmem:[%s634_s19 + $0x1] sm:$0x1] %v59_v1  ;;  %s689_s20 = smov (!%p350_p2, %s66_s20), 63  ;;  %p87_p5 = scmp.gt.s32.totalorder %s624_s13, 0 }
  0x31   : > { %s691_s12 = smov (!%p76_p3, %s622_s12), 0  ;;  %s69_s22 = scalar_lea.vmem [#allocation4], %s689_s20 }
  0x32   : > { %v70_v2 = vld [vmem:[%s69_s22] sm:$0x1]  ;;  %s693_s12 = smov (!%p357_p4, %s691_s12), 63  ;;  %p364_p6 = scmp.lt.s32.totalorder %s624_s13, 63 }
  0x33   : > { %356 = vst [vmem:[%s634_s19 + $0x2] sm:$0x1] %v70_v2  ;;  %s88_s23 = scalar_select %p87_p5, %s624_s13, 0 }
  0x34   : > { %s80_s24 = scalar_lea.vmem [#allocation4], %s693_s12  ;;  %p98_p7 = scmp.gt.s32.totalorder %s628_s16, 0 }
  0x35   : > { %v81_v3 = vld [vmem:[%s80_s24] sm:$0x1]  ;;  %p371_p8 = scmp.lt.s32.totalorder %s628_s16, 63  ;;  %s695_s23 = smov (!%p364_p6, %s88_s23), 63 }
  0x36   : > { %363 = vst [vmem:[%s634_s19 + $0x3] sm:$0x1] %v81_v3  ;;  %s697_s16 = smov (!%p98_p7, %s628_s16), 0  ;;  %p109_p9 = scmp.gt.s32.totalorder %s630_s17, 0 }
  0x37   : > { %s91_s25 = scalar_lea.vmem [#allocation4], %s695_s23  ;;  %s699_s16 = smov (!%p371_p8, %s697_s16), 63 }
  0x38   : > { %v92_v4 = vld [vmem:[%s91_s25] sm:$0x1]  ;;  %s110_s26 = scalar_select %p109_p9, %s630_s17, 0 }
  0x39   : > { %370 = vst [vmem:[%s634_s19 + $0x4] sm:$0x1] %v92_v4  ;;  %p378_p10 = scmp.lt.s32.totalorder %s630_s17, 63  ;;  %s102_s27 = scalar_lea.vmem [#allocation4], %s699_s16 }
  0x3a   : > { %v103_v5 = vld [vmem:[%s102_s27] sm:$0x1]  ;;  %s117_s0 = sadd.s32 7, %s613_s5  ;;  %p36_p13 = scmp.ge.s32.totalorder %s39_s4, 2  }
  0x3b   : > { %377 = vst [vmem:[%s634_s19 + $0x5] sm:$0x1] %v103_v5  ;;  %s701_s26 = smov (!%p378_p10, %s110_s26), 63  ;;  %s119_s30 = sld [smem:[#allocation3 + %s117_s0]] }
  0x3c   : > { %s113_s3 = scalar_lea.vmem [#allocation4], %s701_s26  ;;  %s564_s5 = smov (%p36_p13), [#allocation7]  }
  0x3d   : > { %v114_v6 = vld [vmem:[%s113_s3] sm:$0x1]  ;;  %s253_s6 = sshll.u32 (%p36_p13), %s564_s5, 4  ;;  %s254_s6 = int_to_ptr.vmem [resolvable:$true] %s253_s6 }
  0x3e   : > { %384 = vst [vmem:[%s634_s19 + $0x6] sm:$0x1] %v114_v6  ;;  %s524_s7 = scalar_lea.vmem (%p36_p13), %s254_s6, 256  ;;  %p529_p1 = scmp.lt.s32.totalorder (%p36_p13), %s254_s6, %s254_s6 }
  0x3f   :  { %p525_p0 = scmp.ne.s32.totalorder (%p36_p13), %s254_s6, %s524_s7  ;;  %p530_p2 = scmp.lt.s32.totalorder (%p36_p13), %s524_s7, %s524_s7 }
  0x41   : > { %p120_p11 = scmp.gt.s32.totalorder %s119_s30, 0  ;;  %p385_p12 = scmp.lt.s32.totalorder %s119_s30, 63 }
  0x42   :  { %38 = sbr.rel (!%p36_p13) target bundleno = 32 (0x20), region = 82  ;;  %p531_p3 = por (%p36_p13), %p530_p2, %p529_p1 }
  0x43   : > { %s703_s30 = smov (!%p120_p11, %s119_s30), 0 }
  0x44   : > { %s705_s30 = smov (!%p385_p12, %s703_s30), 63  ;;  %p532_p4 = pnand (%p36_p13), %p531_p3, %p525_p0 }
  0x45   : > { %s124_s1 = scalar_lea.vmem [#allocation4], %s705_s30 }
  0x46   : > { %v125_v7 = vld [vmem:[%s124_s1] sm:$0x1] }
  0x47   : > { %391 = vst [vmem:[%s634_s19 + $0x7] sm:$0x1] %v125_v7 }
  0x4e   :  { %v242_v8 = vld [vmem:[#allocation7] sm:$0xff]  ;;  %v243_v9 = vld [vmem:[#allocation7 + $0x8] sm:$0xff] }
  0x4f   :  { %v244_v10 = vmul.f32 11.313708, %v242_v8  ;;  %v245_v11 = vmul.f32 11.313708, %v243_v9 }
  0x51   :  { %246 = vst [vmem:[#allocation7] sm:$0xff] %v244_v10  ;;  %247 = vst [vmem:[#allocation7 + $0x8] sm:$0xff] %v245_v11 }
  0x52   :  { %535 = shalt.err (!%p532_p4)
}
  0x53   :  { %s536_s4 = scalar_lea.hbm %s679_s2, 256 }
  0x54   :  { %p537_p5 = scmp.ne.s32.totalorder %s679_s2, %s536_s4  ;;  %p540_p6 = scmp.lt.u32.totalorder %s536_s4, %s679_s2 }
  0x56   :  { %p542_p7 = pnand %p540_p6, %p537_p5 }
  0x58   :  { %545 = shalt.err (!%p542_p7)
}
  0x59   :  { %259 = dma.vmem_to_hbm [thread:$0]  %s254_s6, 256, %s679_s2, [#allocation6], %s562_s28, %s562_s28, %s563_s29  }
  0x5a   :  { %554 = dma.done.wait [#allocation6], 256  }
  0x5b   :  { %555 = vsyncadd [#allocation6], 4294967040 }
  0x5c   :  { %263 = vsyncpa [#allocation5], 1 }
  0x5d   :  { %264 = vsyncpa [#allocation6], 1 }

</bundles_post_ra>
